<compile_context>
chip_gen: v7x
topology: tpu7x:2x2x1
jax: 0.10.0
libtpu: 0.0.40
codegen_flags: <defaults>
</compile_context>

<pallas_src>
import jax
import jax.numpy as jnp
from jax.experimental import pallas as pl
from jax.experimental.pallas import tpu as pltpu


def _decompress_kernel(w_ref, zp_ref, sc_ref, out_ref):
    # w_ref:   (TO, TI) uint8 tile of the compressed weight
    # zp_ref:  (TO, 1)  per-row zero point (scale.dtype)
    # sc_ref:  (TO, 1)  per-row scale     (scale.dtype)
    # out_ref: (TO, TI) decompressed tile (out_dtype)
    sc = sc_ref[...]                                 # (TO, 1)
    zp = zp_ref[...]                                 # (TO, 1)
    w = w_ref[...].astype(sc.dtype)                  # exact uint8 -> f32 cast
    out_ref[...] = ((w - zp) * sc).astype(out_ref.dtype)   # broadcast over lanes


# Double-buffered working-set budget used when auto-picking tiles.  Large enough to
# amortize per-step overhead (a 24 MiB step is ~7.5us even at v7x's 3.2 TB/s), small
# enough to fit every generation's VMEM (v7x physical VMEM is only 64 MiB per TC).
_WORKING_SET_BUDGET = 24 * 1024 * 1024


def _vmem_capacity_bytes():
    try:
        return int(pltpu.get_tpu_info().vmem_capacity_bytes)
    except Exception:
        return 64 * 1024 * 1024  # conservative (v7x per-TC size); fine on v5e/v6e too


def _choose_tiles(O, I, out_itemsize, to, ti):
    """Pick (to, ti) honoring uint8 (32,128) packing, VMEM budget and megacore split."""
    # Column tile: default to the full row (fully contiguous DMAs, 1-D grid).  Only fall
    # back to 2048-wide tiles for absurdly wide rows where even a 32-row full-width tile
    # would not fit the double-buffered budget.
    if ti is None:
        ti = I
        if 2 * 32 * ti * (1 + out_itemsize) > _WORKING_SET_BUDGET:
            ti = 2048
    ti = min(ti, I)
    if ti < I:
        assert ti % 128 == 0, "column tile must be a multiple of 128 (lane width)"

    if to is None:
        if O <= 32:
            to = O  # full-extent block is always layout-legal
        else:
            # Max rows per tile under the double-buffered budget (in + out + zp/scale).
            bytes_per_row = 2 * ti * (1 + out_itemsize) + 16
            max_to = max(32, int(_WORKING_SET_BUDGET // bytes_per_row) // 32 * 32)
            # Keep >= 2 row tiles (ideally ~8) so the "parallel" row axis can be sharded
            # across both v7x TensorCores and step overhead stays amortized.
            pref = max(32, (O // 8) // 32 * 32)
            floor2 = max(32, (O // 2) // 32 * 32)
            to = min(max_to, pref, floor2)
    to = min(to, O)
    if to < O:
        assert to % 32 == 0, "row tile must be a multiple of 32 (uint8 packing)"
        # Prefer an exact divisor of O -> no remainder row tile (no masked partial stores).
        for cand in range(to, 31, -32):
            if O % cand == 0:
                to = cand
                break
    return to, ti


def weights_decompress(weight_u8, zero_point, scale, *, to=None, ti=None, out_dtype=None):
    """Pallas equivalent of WeightsDecompressor.forward.

    Returns (weight.astype(scale.dtype) - zero_point) * scale.  Pass out_dtype=bf16
    whenever the consumer tolerates it: it cuts the dominant HBM writeback in half
    (~1.6x faster) on this bandwidth-bound kernel.
    """
    O, I = weight_u8.shape
    assert zero_point.shape == (O, 1) and scale.shape == (O, 1)
    out_dtype = scale.dtype if out_dtype is None else out_dtype
    out_itemsize = jnp.dtype(out_dtype).itemsize

    to, ti = _choose_tiles(O, I, out_itemsize, to, ti)

    zp = zero_point.astype(scale.dtype)
    sc = scale

    grid_rows = pl.cdiv(O, to)
    grid_cols = pl.cdiv(I, ti)

    if grid_cols == 1:
        # Full-width row tiles: 1-D grid, fully contiguous per-step DMAs.
        grid = (grid_rows,)
        w_spec = pl.BlockSpec((to, ti), lambda i: (i, 0))
        zp_spec = pl.BlockSpec((to, 1), lambda i: (i, 0))
        sc_spec = pl.BlockSpec((to, 1), lambda i: (i, 0))
        out_spec = pl.BlockSpec((to, ti), lambda i: (i, 0))
        dims = ("parallel",)
    else:
        grid = (grid_rows, grid_cols)
        w_spec = pl.BlockSpec((to, ti), lambda i, j: (i, j))
        zp_spec = pl.BlockSpec((to, 1), lambda i, j: (i, 0))
        sc_spec = pl.BlockSpec((to, 1), lambda i, j: (i, 0))
        out_spec = pl.BlockSpec((to, ti), lambda i, j: (i, j))
        dims = ("parallel", "parallel")

    # Double-buffered working set: uint8 input tile + output tile (+ tiny zp/scale rows).
    vmem_needed = 2 * to * ti * (1 + out_itemsize) + 4 * to * 4
    # Keep an explicit limit: v5e's scoped default is only 16 MiB, while v7x has just
    # 64 MiB physical VMEM per TC -> cap at 75% of capacity to leave Mosaic headroom.
    vmem_cap = _vmem_capacity_bytes()
    vmem_limit = int(min(max(vmem_needed + (4 << 20), 32 << 20), int(vmem_cap * 0.75)))

    cost = pl.CostEstimate(
        flops=2 * O * I,
        transcendentals=0,
        bytes_accessed=O * I * 1 + O * I * out_itemsize + 2 * O * 4,
    )

    return pl.pallas_call(
        _decompress_kernel,
        out_shape=jax.ShapeDtypeStruct((O, I), out_dtype),
        grid_spec=pltpu.PrefetchScalarGridSpec(
            num_scalar_prefetch=0,
            grid=grid,
            in_specs=[w_spec, zp_spec, sc_spec],
            out_specs=out_spec,
        ),
        compiler_params=pltpu.CompilerParams(
            dimension_semantics=dims,
            vmem_limit_bytes=vmem_limit,
        ),
        cost_estimate=cost,
    )(weight_u8, zp, sc)


if __name__ == "__main__":
    key = jax.random.PRNGKey(0)
    k_w, k_zp, k_s = jax.random.split(key, 3)

    # Small linear-layer-like shapes: [out_channels=64, in_features=512]
    O, I = 64, 512
    weight_u8 = jax.random.randint(k_w, (O, I), 0, 256, dtype=jnp.int32).astype(jnp.uint8)
    zero_point = jax.random.randint(k_zp, (O, 1), 0, 256, dtype=jnp.int32).astype(jnp.float32)
    scale = (jax.random.uniform(k_s, (O, 1), jnp.float32) * 0.1 + 0.01)

    # Reference (mirrors the PyTorch forward semantics)
    ref = (weight_u8.astype(scale.dtype) - zero_point) * scale

    # 1) Explicit small tiles to exercise a multi-step 2-D grid (2 x 2).
    out = jax.block_until_ready(
        weights_decompress(weight_u8, zero_point, scale, to=32, ti=256))
    assert out.shape == (O, I) and out.dtype == jnp.float32
    assert jnp.allclose(out, ref, atol=1e-6), "mismatch vs reference (tiled)"

    # 2) Auto tiles: ti = full in_features (1-D grid), >= 2 row tiles for megacore.
    out_default = jax.block_until_ready(weights_decompress(weight_u8, zero_point, scale))
    assert out_default.dtype == jnp.float32
    assert jnp.allclose(out_default, ref, atol=1e-6), "mismatch vs reference (auto tiles)"

    # 3) Recommended narrow output dtype (cuts HBM writeback traffic by ~2x).
    out_bf16 = jax.block_until_ready(
        weights_decompress(weight_u8, zero_point, scale, out_dtype=jnp.bfloat16))
    assert out_bf16.dtype == jnp.bfloat16
    assert jnp.allclose(out_bf16.astype(jnp.float32), ref, rtol=1e-2, atol=0.3), \
        "mismatch vs reference (bf16 output)"

    print("KERNEL_OK")
</pallas_src>

<mosaic_0001>
module attributes {stable_mosaic.version = 11 : i64} {
  func.func @_decompress_kernel(%arg0: i32, %arg1: i32, %arg2: memref<32x256xi8, #tpu.memory_space<vmem>>, %arg3: memref<32x1xf32, #tpu.memory_space<vmem>>, %arg4: memref<32x1xf32, #tpu.memory_space<vmem>>, %arg5: memref<32x256xf32, #tpu.memory_space<vmem>>) attributes {dimension_semantics = [#tpu.dimension_semantics<parallel>, #tpu.dimension_semantics<parallel>], iteration_bounds = array<i64: 2, 2>, scalar_prefetch = 0 : i64, scratch_operands = 0 : i64, tpu.core_type = #tpu.core_type<tc>, window_params = [{transform_indices = @transform_0, window_bounds = array<i64: 32, 256>}, {transform_indices = @transform_1, window_bounds = array<i64: 32, 1>}, {transform_indices = @transform_2, window_bounds = array<i64: 32, 1>}, {transform_indices = @transform_3, window_bounds = array<i64: 32, 256>}]} {
    %c0 = arith.constant 0 : index
    %c0_0 = arith.constant 0 : index
    %0 = vector.load %arg4[%c0, %c0_0] : memref<32x1xf32, #tpu.memory_space<vmem>>, vector<32x1xf32>
    %c0_1 = arith.constant 0 : index
    %c0_2 = arith.constant 0 : index
    %1 = vector.load %arg3[%c0_1, %c0_2] : memref<32x1xf32, #tpu.memory_space<vmem>>, vector<32x1xf32>
    %c0_3 = arith.constant 0 : index
    %c0_4 = arith.constant 0 : index
    %2 = vector.load %arg2[%c0_3, %c0_4] : memref<32x256xi8, #tpu.memory_space<vmem>>, vector<32x256xi8>
    %3 = arith.uitofp %2 : vector<32x256xi8> to vector<32x256xf32>
    %4 = vector.broadcast %1 : vector<32x1xf32> to vector<32x256xf32>
    %5 = arith.subf %3, %4 : vector<32x256xf32>
    %6 = vector.broadcast %0 : vector<32x1xf32> to vector<32x256xf32>
    %7 = arith.mulf %5, %6 : vector<32x256xf32>
    %c0_5 = arith.constant 0 : index
    %c0_6 = arith.constant 0 : index
    %8 = vector.load %arg5[%c0_5, %c0_6] : memref<32x256xf32, #tpu.memory_space<vmem>>, vector<32x256xf32>
    tpu.vector_store %arg5[%c0_5, %c0_6], %7 {strides = array<i32>} : memref<32x256xf32, #tpu.memory_space<vmem>>, vector<32x256xf32>,
    return
  }
  func.func @transform_0(%arg0: i32, %arg1: i32) -> (i32, i32) {
    %c0_i32 = arith.constant 0 : i32
    return %arg0, %arg1 : i32, i32
  }
  func.func @transform_1(%arg0: i32, %arg1: i32) -> (i32, i32) {
    %c0_i32 = arith.constant 0 : i32
    %c0_i32_0 = arith.constant 0 : i32
    return %arg0, %c0_i32 : i32, i32
  }
  func.func @transform_2(%arg0: i32, %arg1: i32) -> (i32, i32) {
    %c0_i32 = arith.constant 0 : i32
    %c0_i32_0 = arith.constant 0 : i32
    return %arg0, %c0_i32 : i32, i32
  }
  func.func @transform_3(%arg0: i32, %arg1: i32) -> (i32, i32) {
    %c0_i32 = arith.constant 0 : i32
    return %arg0, %arg1 : i32, i32
  }
}

</mosaic_0001>

<bundles_post_ra>
// kernel: tpu_custom_call.1
= control target key start
LH: loop header
LB: loop body
LE: loop exit
PB: predicated region body
PF: predicated region fallthrough
CT: control target
= control target key end

     0   :  { %8 = vsyncpa [#allocation3], 0  ;;  %s839_s0 = inlined_call_operand.vmem [shape: u8[64,512], index: 0, kind: input, shape index: {}]   ;;  %s840_s1 = inlined_call_operand.vmem [shape: f32[64,1], index: 1, kind: input, shape index: {}]   ;;  %s841_s2 = inlined_call_operand.vmem [shape: f32[64,1], index: 2, kind: input, shape index: {}]   ;;  %s842_s3 = inlined_call_operand.hbm [shape: f32[64,512], index: 3, kind: output, shape index: {}]  }
   0x1   :  { %10 = vsyncpa [#allocation3 + $0x1], 0  ;;  %s685_s12 = smov 0   ;;  %s687_s13 = smov 0  }
   0x2   :  { %s689_s14 = smov 0   ;;  %s691_s15 = smov 0  }
   0x3   :  { %s693_s16 = smov 0   ;;  %s695_s17 = smov 0  }
   0x4   :  { %s697_s18 = smov 0   ;;  %s699_s19 = smov 0  }
   0x5 LB: > { %s466_s20 = sadd.s32 4294967295, %s658_s19   ;;  %s467_s21 = sadd.s32 4294967294, %s658_s19   ;;  %s658_s19 = sphi %s699_s19, %s16_s19   ;;  %s654_s18 = sphi %s697_s18, %s851_s18   ;;  %s650_s17 = sphi %s695_s17, %s850_s17   ;;  %s646_s16 = sphi %s693_s16, %s849_s16   ;;  %s642_s15 = sphi %s691_s15, %s848_s15   ;;  %s638_s14 = sphi %s689_s14, %s847_s14   ;;  %s634_s13 = sphi %s687_s13, %s846_s13   ;;  %s630_s12 = sphi %s685_s12, %s845_s12  }
   0x6   : > { %s25_s22 = sadd.s32 1, %s650_s17  ;;  %s28_s23 = sadd.s32 1, %s654_s18 }
   0x7   : > { %p26_p0 = scmp.ge.s32.totalorder %s25_s22, 2  ;;  %p127_p1 = scmp.ne.s32.totalorder %s638_s14, %s634_s13 }
   0x8   : > { %p128_p2 = scmp.eq.s32.totalorder %s466_s20, 3  ;;  %p133_p5 = scmp.ne.s32.totalorder %s634_s13, %s630_s12 }
   0x9   : > { %s853_s22 = smov (%p26_p0, %s25_s22), 0  ;;  %s855_s23 = smov (!%p26_p0, %s28_s23), %s654_s18 }
   0xa   : > { %s113_s24 = ssub.s32 %s650_s17, %s853_s22  ;;  %p736_p3 = por %p128_p2, %p127_p1 }
   0xb   : > { %p30_p4 = scmp.ge.s32.totalorder %s855_s23, 2  ;;  %p134_p6 = scmp.eq.s32.totalorder %s467_s21, 3 }
   0xc   : > { %p470_p7 = scmp.ge.s32.totalorder %s658_s19, 1  ;;  %p183_p9 = scmp.lt.s32.totalorder %s658_s19, 5 }
   0xd   : > { %s857_s23 = smov (%p30_p4, %s855_s23), 0  ;;  %p745_p8 = por %p134_p6, %p133_p5 }
   0xe   : > { %s112_s27 = ssub.s32 %s654_s18, %s857_s23  ;;  %s117_s28 = sadd.s32 1, %s638_s14 }
   0xf   : > { %s114_s29 = sor.u32 %s113_s24, %s112_s27  ;;  %p184_p10 = pnand %p470_p7, %p183_p9 }
  0x10   : > { %p115_p11 = scmp.eq.s32.totalorder %s114_s29, 0  ;;  %s475_s4 = sshll.u32 (!%p184_p10), %s646_s16, 2  ;;  %v660_v0 = vmov (!%p184_p10), 0  }
  0x11   : > { %187 = sbr.rel (%p184_p10) target bundleno = 187 (0xbb), region = 32  ;;  %563 = vset.pattern.permute.xlu1 (!%p184_p10), %v660_v0  ;;  %562 = vset.pattern.permute.xlu0 (!%p184_p10), %v660_v0  ;;  %p232_p12 = scmp.lt.s32.totalorder (!%p184_p10), %s475_s4, 7 }
  0x12   : > { %s754_s30 = scalar_select %p115_p11, %s638_s14, %s117_s28  }
  0x13   : > { %s764_s20 = sshll.u32 (!%p184_p10), %s642_s15, 1  ;;  %p222_p13 = scmp.lt.s32.totalorder (!%p184_p10), %s646_s16, 1 }
  0x14   : > { %p224_p0 = scmp.lt.s32.totalorder (!%p184_p10), %s764_s20, 3  ;;  %s486_s15 = sshll.u32 (!%p184_p10), %s646_s16, 4 }
  0x15   : > { %s218_s7 = sand.u32 (!%p184_p10), 1, %s634_s13  }
  0x16   : > { %s471_s9 = sshll.u32 (!%p184_p10), %s218_s7, 6 }
  0x17   : > { %s220_s10 = scalar_lea.vmem (!%p184_p10), [#allocation2], %s471_s9 }
  0x18   : > { %s859_s4 = smov (!%p232_p12, %s475_s4), 7 }
  0x19   : > { %s476_s5 = sshll.u32 %s859_s4, 3 }
  0x1a   : > { %s235_s8 = scalar_lea.vmem %s840_s1, %s476_s5  ;;  %s241_s11 = scalar_lea.vmem %s841_s2, %s476_s5 }
  0x1b   : > { %v251_v1 = vld [vmem:[%s235_s8 + $0x10] sm:$0xff]  ;;  %v249_v2 = vld [vmem:[%s235_s8] sm:$0xff]  ;;  %v252_v3 = vld [vmem:[%s235_s8 + $0x18] sm:$0xff]  ;;  %s223_s21 = scalar_select %p222_p13, %s646_s16, 1 }
  0x1c   : > { %291 = vperm.xlu1 %563, %v251_v1   ;;  %281 = vperm.xlu0 %562, %v249_v2   ;;  %v250_v4 = vld [vmem:[%s235_s8 + $0x8] sm:$0xff]  ;;  %v245_v6 = vld [vmem:[%s241_s11] sm:$0xff]  ;;  %v248_v7 = vld [vmem:[%s241_s11 + $0x18] sm:$0xff]  ;;  %s225_s24 = scalar_select %p224_p0, %s764_s20, 3 }
  0x1d   : > { %v246_v5 = vld [vmem:[%s241_s11 + $0x8] sm:$0xff]  ;;  %v247_v8 = vld [vmem:[%s241_s11 + $0x10] sm:$0xff]  ;;  %s473_s27 = sshll.u32 %s223_s21, 2  ;;  %s357_s8 = sadd.s32 %s486_s15, %s764_s20 }
  0x1e   : > { %s227_s28 = sadd.s32 %s473_s27, %s225_s24  ;;  %s483_s16 = sshll.u32 %s357_s8, 7 }
  0x1f   : > { %s474_s29 = sshll.u32 %s227_s28, 3  ;;  %s360_s11 = sshll.u32 %s220_s10, 4  ;;  %s783_s11 = int_to_ptr.vmem [resolvable:$true] %s360_s11 }
  0x20   : > { %296 = vperm.xlu1 %563, %v252_v3   ;;  %286 = vperm.xlu0 %562, %v250_v4   ;;  %s229_s6 = scalar_lea.vmem %s839_s0, %s474_s29  ;;  %s781_s24 = scalar_lea.hbm %s842_s3, %s483_s16 }
  0x21   : > { %v253_v9 = vld [vmem:[%s229_s6] sm:$0xff]  ;;  %v254_v10 = vld [vmem:[%s229_s6 + $0x8] sm:$0xff]  ;;  %s787_s27 = scalar_lea.sflag [#allocation3], %s218_s7  ;;  %s564_s28 = scalar_lea.vmem %s783_s11, 1024 }
  0x22   : > { %v255_v11 = vunpack.c.0.s8 %v253_v9  ;;  %v256_v12 = vunpack.c.0.s8 %v254_v10  ;;  %v257_v13 = vunpack.c.1.s8 %v253_v9  ;;  %v258_v14 = vunpack.c.1.s8 %v254_v10  ;;  %p565_p1 = scmp.ne.s32.totalorder %s783_s11, %s564_s28  ;;  %s661_s29 = smov [#allocation2]  }
  0x23   : > { %v259_v15 = vunpack.c.2.s8 %v253_v9  ;;  %v260_v16 = vunpack.c.2.s8 %v254_v10  ;;  %v261_v17 = vunpack.c.3.s8 %v253_v9  ;;  %v262_v18 = vunpack.c.3.s8 %v254_v10  ;;  %s568_s4 = sshll.u32 %s661_s29, 4  ;;  %s569_s4 = int_to_ptr.vmem [resolvable:$false] %s568_s4 }
  0x24   : > { %314 = vperm.xlu1 %563, %v246_v5   ;;  %309 = vperm.xlu0 %562, %v245_v6   ;;  %v263_v19 = vand.u32 255, %v255_v11  ;;  %v264_v20 = vand.u32 255, %v256_v12  ;;  %v265_v21 = vand.u32 255, %v257_v13  ;;  %v266_v22 = vand.u32 255, %v258_v14  ;;  %p566_p2 = pnand %p565_p1, %p736_p3  ;;  %s570_s5 = scalar_lea.vmem %s569_s4, 2048 }
  0x25   : > { %v267_v25 = vand.u32 255, %v259_v15  ;;  %v268_v26 = vand.u32 255, %v260_v16  ;;  %v269_v27 = vand.u32 255, %v261_v17  ;;  %v270_v28 = vand.u32 255, %v262_v18  ;;  %p571_p5 = scmp.lt.s32.totalorder %s783_s11, %s569_s4  ;;  %p572_p6 = scmp.lt.s32.totalorder %s570_s5, %s564_s28 }
  0x26   : > { %v271_v29 = vcvt.s32.f32 %v263_v19  ;;  %v272_v30 = vcvt.s32.f32 %v264_v20  ;;  %v273_v31 = vcvt.s32.f32 %v265_v21  ;;  %v274_v32 = vcvt.s32.f32 %v266_v22  ;;  %p567_p4 = pneg %p566_p2 }
  0x27   : > { %v275_v35 = vcvt.s32.f32 %v267_v25  ;;  %v276_v36 = vcvt.s32.f32 %v268_v26  ;;  %v277_v37 = vcvt.s32.f32 %v269_v27  ;;  %v278_v38 = vcvt.s32.f32 %v270_v28  ;;  %p573_p7 = por %p572_p6, %p571_p5 }
  0x28   : > { %324 = vperm.xlu1 %563, %v248_v7   ;;  %319 = vperm.xlu0 %562, %v247_v8  }
  0x29   : > { %p574_p9 = pnand %p573_p7, %p567_p4 }
  0x9b   : > { %v292_v23 = vpop.permute.xlu1 %291  ;;  %v282_v24 = vpop.permute.xlu0 %281 }
  0x9c   : > { %v299_v39 = vsub.f32 %v271_v29, %v282_v24  ;;  %v300_v40 = vsub.f32 %v272_v30, %v282_v24  ;;  %v303_v49 = vsub.f32 %v275_v35, %v292_v23  ;;  %v304_v50 = vsub.f32 %v276_v36, %v292_v23 }
  0x9f   : > { %v297_v33 = vpop.permute.xlu1 %296  ;;  %v287_v34 = vpop.permute.xlu0 %286 }
  0xa0   : > { %v301_v41 = vsub.f32 %v273_v31, %v287_v34  ;;  %v302_v42 = vsub.f32 %v274_v32, %v287_v34  ;;  %v305_v51 = vsub.f32 %v277_v37, %v297_v33  ;;  %v306_v52 = vsub.f32 %v278_v38, %v297_v33 }
  0xa3   : > { %v315_v43 = vpop.permute.xlu1 %314  ;;  %v310_v44 = vpop.permute.xlu0 %309 }
  0xa4   : > { %v329_v45 = vmul.f32 %v315_v43, %v301_v41  ;;  %v330_v46 = vmul.f32 %v315_v43, %v302_v42  ;;  %v327_v47 = vmul.f32 %v310_v44, %v299_v39  ;;  %v328_v48 = vmul.f32 %v310_v44, %v300_v40 }
  0xa6   : > { %337 = vst [vmem:[%s220_s10 + $0x10] sm:$0xff] %v329_v45  ;;  %338 = vst [vmem:[%s220_s10 + $0x18] sm:$0xff] %v330_v46 }
  0xa7   : > { %335 = vst [vmem:[%s220_s10] sm:$0xff] %v327_v47  ;;  %336 = vst [vmem:[%s220_s10 + $0x8] sm:$0xff] %v328_v48  ;;  %v325_v53 = vpop.permute.xlu1 %324  ;;  %v320_v54 = vpop.permute.xlu0 %319 }
  0xa8   : > { %v333_v55 = vmul.f32 %v325_v53, %v305_v51  ;;  %v334_v56 = vmul.f32 %v325_v53, %v306_v52  ;;  %v331_v57 = vmul.f32 %v320_v54, %v303_v49  ;;  %v332_v58 = vmul.f32 %v320_v54, %v304_v50 }
  0xaa   : > { %341 = vst [vmem:[%s220_s10 + $0x30] sm:$0xff] %v333_v55  ;;  %342 = vst [vmem:[%s220_s10 + $0x38] sm:$0xff] %v334_v56 }
  0xab   : > { %339 = vst [vmem:[%s220_s10 + $0x20] sm:$0xff] %v331_v57  ;;  %340 = vst [vmem:[%s220_s10 + $0x28] sm:$0xff] %v332_v58 }
  0xac   : > { %577 = shalt.err (!%p574_p9)
}
  0xad   : > { %s578_s6 = scalar_lea.hbm %s781_s24, 1024  ;;  %s582_s8 = scalar_lea.hbm %s842_s3, 4096 }
  0xae   : > { %p579_p10 = scmp.ne.s32.totalorder %s781_s24, %s578_s6  ;;  %p583_p13 = scmp.lt.u32.totalorder %s781_s24, %s842_s3 }
  0xaf   : > { %p584_p0 = scmp.lt.u32.totalorder %s582_s8, %s578_s6  ;;  %p586_p2 = scmp.lt.u32.totalorder %s578_s6, %s781_s24 }
  0xb0   : > { %p580_p11 = pnand %p579_p10, %p736_p3 }
  0xb1   : > { %p585_p1 = por %p584_p0, %p583_p13 }
  0xb2   : > { %p581_p12 = pneg %p580_p11 }
  0xb3   : > { %p587_p4 = por %p586_p2, %p585_p1 }
  0xb5   : > { %p588_p5 = pnand %p587_p4, %p581_p12 }
  0xb7   : > { %591 = shalt.err (!%p588_p5)
}
  0xb8   : > { %s662_s10 = smov 256   ;;  %s663_s20 = smov 512  }
  0xb9   : > { %s664_s21 = smov 16  }
  0xba   : > { %487 = dma.vmem_to_hbm [thread:$0]  (%p736_p3), %s783_s11, 1024, %s781_s24, %s787_s27, %s662_s10, %s663_s20, %s664_s21  }
  0xbb PF: > { %p493_p6 = scmp.ge.s32.totalorder %s658_s19, 2  ;;  %s375_s28 = sand.u32 1, %s630_s12  }
  0xbc   : > { %s376_s29 = scalar_lea.sflag [#allocation3], %s375_s28 }
  0xbd   : > { %p490_p7 = pnand %p493_p6, %p745_p8 }
  0xbf   : > { %625 = dma.done.wait (!%p490_p7), %s376_s29, 1024  }
  0xc0   : > { %627 = vsyncadd (!%p490_p7), %s376_s29, 4294966272  ;;  %s16_s19 = sadd.s32 1, %s658_s19   ;;  %s845_s12 = smov %s634_s13 }
  0xc1   : > { %p13_p9 = scmp.ge.s32.totalorder %s16_s19, 6   ;;  %s846_s13 = smov %s638_s14 }
  0xc2   : > { %s847_s14 = smov %s754_s30  ;;  %s848_s15 = smov %s650_s17 }
  0xc3   : > { %s849_s16 = smov %s654_s18  ;;  %s850_s17 = smov %s853_s22 }
  0xc4   : > { %s851_s18 = smov %s857_s23  ;;  %15 = sbr.rel (!%p13_p9) target bundleno = 5 (0x5), region = 73 }
  0xcb   :  { %381 = vsyncpa [#allocation3], 1 }
  0xcc   :  { %383 = vsyncpa [#allocation3 + $0x1], 1 }

</bundles_post_ra>
